<compile_context>
chip_gen: v6e
topology: v6e:2x2x1
jax: 0.10.0
libtpu: 0.0.40
codegen_flags: <defaults>
</compile_context>

<pallas_src>
import functools
import math

import jax
import jax.numpy as jnp
from jax.experimental import pallas as pl
from jax.experimental.pallas import tpu as pltpu


# dot_general dimension_numbers (head axis 0 is the batch dim everywhere):
#   contract last dims of both operands:        'hqd,hkd->hqk'
_DN_LAST_LAST = (((2,), (2,)), ((0,), (0,)))
#   contract lhs last dim with rhs middle dim:  'hqk,hkd->hqd'
_DN_PV = (((2,), (1,)), ((0,), (0,)))


# ---------------------------------------------------------------------------
# Fused kernel: one program per batch chunk of `bb` elements
# ---------------------------------------------------------------------------
def _mha_fused_kernel(xq_ref, xk_ref, wq_ref, bq_ref, wk_ref, bk_ref,
                      wo_ref, bo_ref, o_ref, *, n_heads):
    bb, S, D = xq_ref.shape
    H = n_heads

    wq = wq_ref[...]          # (H, d_k, D)  bf16, 1/sqrt(d_k) pre-folded
    wk = wk_ref[...]          # (H, d_k, D)  bf16
    wo = wo_ref[...]          # (H, D, d_k)  bf16
    bq = bq_ref[...]          # (H, 1, d_k)  f32, scale pre-folded
    bk = bk_ref[...]          # (H, 1, d_k)  f32
    bo = bo_ref[...]          # (1, D)       f32

    for b in range(bb):       # static unroll; bb is small by construction
        # Broadcast activations over the head axis so every matmul is a plain
        # head-batched dot_general (no reshape / transpose / lane slicing).
        xq = jnp.broadcast_to(xq_ref[b], (H, S, D))   # bf16
        xk = jnp.broadcast_to(xk_ref[b], (H, S, D))   # bf16

        # Q / K projections, head-batched, full-D contraction, f32 accumulate.
        q = jax.lax.dot_general(xq, wq, _DN_LAST_LAST,
                                preferred_element_type=jnp.float32) + bq
        k = jax.lax.dot_general(xk, wk, _DN_LAST_LAST,
                                preferred_element_type=jnp.float32) + bk
        qb = q.astype(jnp.bfloat16)                   # (H, S, d_k)
        kb = k.astype(jnp.bfloat16)                   # (H, S, d_k)

        # Scores (scale already folded into Wq/bq) and softmax in f32.
        s = jax.lax.dot_general(qb, kb, _DN_LAST_LAST,
                                preferred_element_type=jnp.float32)  # (H, S, S)
        m = jnp.max(s, axis=-1, keepdims=True)
        e = jnp.exp(s - m)
        inv_l = pl.reciprocal(jnp.sum(e, axis=-1, keepdims=True), approx=True)
        p = (e * inv_l).astype(jnp.bfloat16)          # (H, S, S)

        # value == projected key, faithful to the reference module.
        ctx = jax.lax.dot_general(p, kb, _DN_PV,
                                  preferred_element_type=jnp.float32)  # (H, S, d_k)

        # Output projection with the head merge folded in: per-head matmul
        # against Wo[:, h*d_k:(h+1)*d_k].T, then sum over heads (cheap VPU add).
        out_h = jax.lax.dot_general(ctx.astype(jnp.bfloat16), wo, _DN_LAST_LAST,
                                    preferred_element_type=jnp.float32)  # (H, S, D)
        out = jnp.sum(out_h, axis=0) + bo             # (S, D) f32
        o_ref[b] = out.astype(o_ref.dtype)


# ---------------------------------------------------------------------------
# Wrappers
# ---------------------------------------------------------------------------
def _mha_pallas(xq, xk, wq, bq, wk, bk, wo, bo, n_heads, out_dtype):
    B, S, D = xq.shape
    H = n_heads
    d_k = D // H

    # Whole batch in one program for tiny shapes (grid collapse). For large
    # B*S, shrink bb so per-program VMEM stays bounded; the axis is "parallel".
    bb = B
    grid = (pl.cdiv(B, bb),)

    kernel = functools.partial(_mha_fused_kernel, n_heads=n_heads)

    act_spec = pl.BlockSpec((bb, S, D), lambda i: (i, 0, 0))
    w_spec = pl.BlockSpec((H, d_k, D), lambda i: (0, 0, 0))   # grid-invariant
    b_spec = pl.BlockSpec((H, 1, d_k), lambda i: (0, 0, 0))   # grid-invariant
    wo_spec = pl.BlockSpec((H, D, d_k), lambda i: (0, 0, 0))
    bo_spec = pl.BlockSpec((1, D), lambda i: (0, 0))

    return pl.pallas_call(
        kernel,
        out_shape=jax.ShapeDtypeStruct((B, S, D), out_dtype),
        grid=grid,
        in_specs=[act_spec, act_spec,
                  w_spec, b_spec,     # Wq, bq (scale folded)
                  w_spec, b_spec,     # Wk, bk
                  wo_spec, bo_spec],  # Wo, bo
        out_specs=act_spec,
        compiler_params=pltpu.CompilerParams(
            dimension_semantics=("parallel",),
            vmem_limit_bytes=32 * 1024 * 1024,
        ),
    )(xq, xk, wq, bq, wk, bk, wo, bo)


@functools.partial(jax.jit, static_argnames=("n_heads",))
def multi_headed_attention(query, key, value, params, *, n_heads):
    """Forward pass of MultiHeadedAttention (eval mode, mask=None).

    query/key/value: (B, S, D) float32.
    params: wq,bq,wk,bk,wv,bv,wo,bo (PyTorch nn.Linear layout: W is (out, in)).

    NOTE: the reference module feeds value=key.transpose(1, 2) into Attention,
    so the value projection never reaches the output; the dead Wv matmul is
    dropped (value / wv / bv are accepted but unused).
    """
    del value  # dead in the reference forward
    B, S, D = query.shape
    H = n_heads
    d_k = D // H
    scale = 1.0 / math.sqrt(d_k)

    # One-time parameter layout prep (fused under jit):
    #   * 1/sqrt(d_k) folded into Wq / bq.
    #   * weights reshaped head-major and cast to bf16 for the MXU.
    wq_r = (params["wq"] * scale).reshape(H, d_k, D).astype(jnp.bfloat16)
    bq_r = (params["bq"] * scale).reshape(H, 1, d_k).astype(jnp.float32)
    wk_r = params["wk"].reshape(H, d_k, D).astype(jnp.bfloat16)
    bk_r = params["bk"].reshape(H, 1, d_k).astype(jnp.float32)
    wo_r = params["wo"].reshape(D, H, d_k).transpose(1, 0, 2).astype(jnp.bfloat16)
    bo_r = params["bo"].reshape(1, D).astype(jnp.float32)

    xq = query.astype(jnp.bfloat16)   # halves activation DMA bytes
    xk = key.astype(jnp.bfloat16)

    return _mha_pallas(xq, xk, wq_r, bq_r, wk_r, bk_r, wo_r, bo_r,
                       n_heads, query.dtype)


# ---------------------------------------------------------------------------
# Main
# ---------------------------------------------------------------------------
if __name__ == "__main__":
    B, S, D, H = 2, 8, 32, 4  # batch, seq, d_model, heads (d_k = 8)

    key0 = jax.random.PRNGKey(0)
    keys = jax.random.split(key0, 12)

    # Deterministic parameter init (PyTorch nn.Linear layout: W (out, in), b (out,))
    scale = 1.0 / math.sqrt(D)
    params = {
        "wq": jax.random.uniform(keys[0], (D, D), jnp.float32, -scale, scale),
        "bq": jax.random.uniform(keys[1], (D,), jnp.float32, -scale, scale),
        "wk": jax.random.uniform(keys[2], (D, D), jnp.float32, -scale, scale),
        "bk": jax.random.uniform(keys[3], (D,), jnp.float32, -scale, scale),
        "wv": jax.random.uniform(keys[4], (D, D), jnp.float32, -scale, scale),
        "bv": jax.random.uniform(keys[5], (D,), jnp.float32, -scale, scale),
        "wo": jax.random.uniform(keys[6], (D, D), jnp.float32, -scale, scale),
        "bo": jax.random.uniform(keys[7], (D,), jnp.float32, -scale, scale),
    }

    query = jax.random.normal(keys[8], (B, S, D), jnp.float32)
    key_in = jax.random.normal(keys[9], (B, S, D), jnp.float32)
    value = jax.random.normal(keys[10], (B, S, D), jnp.float32)

    out = multi_headed_attention(query, key_in, value, params, n_heads=H)
    out = jax.block_until_ready(out)

    # Pure-JAX f32 reference (same math; value == key inside attention, as in
    # the PyTorch module).
    def ref_forward(q_in, k_in):
        d_k = D // H
        q = q_in.reshape(B * S, D) @ params["wq"].T + params["bq"]
        k = k_in.reshape(B * S, D) @ params["wk"].T + params["bk"]
        qh = q.reshape(B, S, H, d_k).transpose(0, 2, 1, 3)
        kh = k.reshape(B, S, H, d_k).transpose(0, 2, 1, 3)
        s = jnp.einsum("bhqd,bhkd->bhqk", qh, kh) / math.sqrt(d_k)
        p = jax.nn.softmax(s, axis=-1)
        ctx = jnp.einsum("bhqk,bhkd->bhqd", p, kh)
        x = ctx.transpose(0, 2, 1, 3).reshape(B * S, D)
        return (x @ params["wo"].T + params["bo"]).reshape(B, S, D)

    ref = ref_forward(query, key_in)
    # Tolerance accounts for bf16 MXU operands + approximate (EUP) reciprocal
    # in the softmax denominator (softmax math itself stays in f32).
    assert jnp.allclose(out, ref, atol=5e-2, rtol=5e-2), "mismatch vs reference"

    print("KERNEL_OK")
</pallas_src>

<mosaic_0001>
module attributes {stable_mosaic.version = 11 : i64} {
  func.func @_mha_fused_kernel(%arg0: i32, %arg1: memref<2x8x32xbf16, #tpu.memory_space<vmem>>, %arg2: memref<2x8x32xbf16, #tpu.memory_space<vmem>>, %arg3: memref<4x8x32xbf16, #tpu.memory_space<vmem>>, %arg4: memref<4x1x8xf32, #tpu.memory_space<vmem>>, %arg5: memref<4x8x32xbf16, #tpu.memory_space<vmem>>, %arg6: memref<4x1x8xf32, #tpu.memory_space<vmem>>, %arg7: memref<4x32x8xbf16, #tpu.memory_space<vmem>>, %arg8: memref<1x32xf32, #tpu.memory_space<vmem>>, %arg9: memref<2x8x32xf32, #tpu.memory_space<vmem>>) attributes {dimension_semantics = [#tpu.dimension_semantics<parallel>], iteration_bounds = array<i64: 1>, scalar_prefetch = 0 : i64, scratch_operands = 0 : i64, tpu.core_type = #tpu.core_type<tc>, window_params = [{transform_indices = @transform_0, window_bounds = array<i64: 2, 8, 32>}, {transform_indices = @transform_1, window_bounds = array<i64: 2, 8, 32>}, {pipeline_mode = #tpu.pipeline_mode<synchronous>, transform_indices = @transform_2, window_bounds = array<i64: 4, 8, 32>}, {pipeline_mode = #tpu.pipeline_mode<synchronous>, transform_indices = @transform_3, window_bounds = array<i64: 4, 1, 8>}, {pipeline_mode = #tpu.pipeline_mode<synchronous>, transform_indices = @transform_4, window_bounds = array<i64: 4, 8, 32>}, {pipeline_mode = #tpu.pipeline_mode<synchronous>, transform_indices = @transform_5, window_bounds = array<i64: 4, 1, 8>}, {pipeline_mode = #tpu.pipeline_mode<synchronous>, transform_indices = @transform_6, window_bounds = array<i64: 4, 32, 8>}, {pipeline_mode = #tpu.pipeline_mode<synchronous>, transform_indices = @transform_7, window_bounds = array<i64: 1, 32>}, {transform_indices = @transform_8, window_bounds = array<i64: 2, 8, 32>}]} {
    %c0 = arith.constant 0 : index
    %c0_0 = arith.constant 0 : index
    %c0_1 = arith.constant 0 : index
    %0 = vector.load %arg3[%c0, %c0_0, %c0_1] : memref<4x8x32xbf16, #tpu.memory_space<vmem>>, vector<4x8x32xbf16>
    %c0_2 = arith.constant 0 : index
    %c0_3 = arith.constant 0 : index
    %c0_4 = arith.constant 0 : index
    %1 = vector.load %arg5[%c0_2, %c0_3, %c0_4] : memref<4x8x32xbf16, #tpu.memory_space<vmem>>, vector<4x8x32xbf16>
    %c0_5 = arith.constant 0 : index
    %c0_6 = arith.constant 0 : index
    %c0_7 = arith.constant 0 : index
    %2 = vector.load %arg7[%c0_5, %c0_6, %c0_7] : memref<4x32x8xbf16, #tpu.memory_space<vmem>>, vector<4x32x8xbf16>
    %c0_8 = arith.constant 0 : index
    %c0_9 = arith.constant 0 : index
    %c0_10 = arith.constant 0 : index
    %3 = vector.load %arg4[%c0_8, %c0_9, %c0_10] : memref<4x1x8xf32, #tpu.memory_space<vmem>>, vector<4x1x8xf32>
    %c0_11 = arith.constant 0 : index
    %c0_12 = arith.constant 0 : index
    %c0_13 = arith.constant 0 : index
    %4 = vector.load %arg6[%c0_11, %c0_12, %c0_13] : memref<4x1x8xf32, #tpu.memory_space<vmem>>, vector<4x1x8xf32>
    %c0_14 = arith.constant 0 : index
    %c0_15 = arith.constant 0 : index
    %5 = vector.load %arg8[%c0_14, %c0_15] : memref<1x32xf32, #tpu.memory_space<vmem>>, vector<1x32xf32>
    %c0_16 = arith.constant 0 : index
    %c0_17 = arith.constant 0 : index
    %c0_18 = arith.constant 0 : index
    %6 = vector.load %arg1[%c0_16, %c0_17, %c0_18] : memref<2x8x32xbf16, #tpu.memory_space<vmem>>, vector<1x8x32xbf16>
    %7 = vector.shape_cast %6 : vector<1x8x32xbf16> to vector<8x32xbf16>
    %8 = vector.shape_cast %7 : vector<8x32xbf16> to vector<1x8x32xbf16>
    %9 = vector.broadcast %8 : vector<1x8x32xbf16> to vector<4x8x32xbf16>
    %c0_19 = arith.constant 0 : index
    %c0_20 = arith.constant 0 : index
    %c0_21 = arith.constant 0 : index
    %10 = vector.load %arg2[%c0_19, %c0_20, %c0_21] : memref<2x8x32xbf16, #tpu.memory_space<vmem>>, vector<1x8x32xbf16>
    %11 = vector.shape_cast %10 : vector<1x8x32xbf16> to vector<8x32xbf16>
    %12 = vector.shape_cast %11 : vector<8x32xbf16> to vector<1x8x32xbf16>
    %13 = vector.broadcast %12 : vector<1x8x32xbf16> to vector<4x8x32xbf16>
    %cst = arith.constant dense<0.000000e+00> : vector<4x8x8xf32>
    %14 = tpu.matmul %9, %0, %cst {dimension_numbers = #tpu.dot_dimension_numbers<[2], [2], [1], [1], [0, 0, 0, 1, 1, 1], [0], [0]>} : vector<4x8x32xbf16>, vector<4x8x32xbf16>, vector<4x8x8xf32> -> vector<4x8x8xf32>
    %15 = vector.broadcast %3 : vector<4x1x8xf32> to vector<4x8x8xf32>
    %16 = arith.addf %14, %15 : vector<4x8x8xf32>
    %cst_22 = arith.constant dense<0.000000e+00> : vector<4x8x8xf32>
    %17 = tpu.matmul %13, %1, %cst_22 {dimension_numbers = #tpu.dot_dimension_numbers<[2], [2], [1], [1], [0, 0, 0, 1, 1, 1], [0], [0]>} : vector<4x8x32xbf16>, vector<4x8x32xbf16>, vector<4x8x8xf32> -> vector<4x8x8xf32>
    %18 = vector.broadcast %4 : vector<4x1x8xf32> to vector<4x8x8xf32>
    %19 = arith.addf %17, %18 : vector<4x8x8xf32>
    %20 = arith.truncf %16 : vector<4x8x8xf32> to vector<4x8x8xbf16>
    %21 = arith.truncf %19 : vector<4x8x8xf32> to vector<4x8x8xbf16>
    %cst_23 = arith.constant dense<0.000000e+00> : vector<4x8x8xf32>
    %22 = tpu.matmul %20, %21, %cst_23 {dimension_numbers = #tpu.dot_dimension_numbers<[2], [2], [1], [1], [0, 0, 0, 1, 1, 1], [0], [0]>} : vector<4x8x8xbf16>, vector<4x8x8xbf16>, vector<4x8x8xf32> -> vector<4x8x8xf32>
    %cst_24 = arith.constant dense<0xFF800000> : vector<4x8xf32>
    %23 = vector.multi_reduction <maximumf>, %22, %cst_24 [2] : vector<4x8x8xf32> to vector<4x8xf32>
    %24 = vector.shape_cast %23 : vector<4x8xf32> to vector<4x8x1xf32>
    %25 = vector.broadcast %24 : vector<4x8x1xf32> to vector<4x8x8xf32>
    %26 = arith.subf %22, %25 : vector<4x8x8xf32>
    %27 = math.exp %26 : vector<4x8x8xf32>
    %cst_25 = arith.constant dense<0.000000e+00> : vector<4x8xf32>
    %28 = vector.multi_reduction <add>, %27, %cst_25 [2] : vector<4x8x8xf32> to vector<4x8xf32>
    %29 = vector.shape_cast %28 : vector<4x8xf32> to vector<4x8x1xf32>
    %30 = tpu.reciprocal %29 {approx = true} : vector<4x8x1xf32> -> vector<4x8x1xf32>
    %31 = vector.broadcast %30 : vector<4x8x1xf32> to vector<4x8x8xf32>
    %32 = arith.mulf %27, %31 : vector<4x8x8xf32>
    %33 = arith.truncf %32 : vector<4x8x8xf32> to vector<4x8x8xbf16>
    %cst_26 = arith.constant dense<0.000000e+00> : vector<4x8x8xf32>
    %34 = tpu.matmul %33, %21, %cst_26 {dimension_numbers = #tpu.dot_dimension_numbers<[2], [1], [1], [2], [0, 0, 0, 1, 1, 2], [0], [0]>} : vector<4x8x8xbf16>, vector<4x8x8xbf16>, vector<4x8x8xf32> -> vector<4x8x8xf32>
    %35 = arith.truncf %34 : vector<4x8x8xf32> to vector<4x8x8xbf16>
    %cst_27 = arith.constant dense<0.000000e+00> : vector<4x8x32xf32>
    %36 = tpu.matmul %35, %2, %cst_27 {dimension_numbers = #tpu.dot_dimension_numbers<[2], [2], [1], [1], [0, 0, 0, 1, 1, 1], [0], [0]>} : vector<4x8x8xbf16>, vector<4x32x8xbf16>, vector<4x8x32xf32> -> vector<4x8x32xf32>
    %cst_28 = arith.constant dense<0.000000e+00> : vector<8x32xf32>
    %37 = vector.multi_reduction <add>, %36, %cst_28 [0] : vector<4x8x32xf32> to vector<8x32xf32>
    %38 = vector.broadcast %5 : vector<1x32xf32> to vector<8x32xf32>
    %39 = arith.addf %37, %38 : vector<8x32xf32>
    %c0_29 = arith.constant 0 : index
    %c0_30 = arith.constant 0 : index
    %c0_31 = arith.constant 0 : index
    %40 = vector.load %arg9[%c0_29, %c0_30, %c0_31] : memref<2x8x32xf32, #tpu.memory_space<vmem>>, vector<1x8x32xf32>
    %41 = vector.shape_cast %40 : vector<1x8x32xf32> to vector<8x32xf32>
    %42 = vector.shape_cast %39 : vector<8x32xf32> to vector<1x8x32xf32>
    tpu.vector_store %arg9[%c0_29, %c0_30, %c0_31], %42 {strides = array<i32>} : memref<2x8x32xf32, #tpu.memory_space<vmem>>, vector<1x8x32xf32>,
    %c1 = arith.constant 1 : index
    %c0_32 = arith.constant 0 : index
    %c0_33 = arith.constant 0 : index
    %43 = vector.load %arg1[%c1, %c0_32, %c0_33] : memref<2x8x32xbf16, #tpu.memory_space<vmem>>, vector<1x8x32xbf16>
    %44 = vector.shape_cast %43 : vector<1x8x32xbf16> to vector<8x32xbf16>
    %45 = vector.shape_cast %44 : vector<8x32xbf16> to vector<1x8x32xbf16>
    %46 = vector.broadcast %45 : vector<1x8x32xbf16> to vector<4x8x32xbf16>
    %c1_34 = arith.constant 1 : index
    %c0_35 = arith.constant 0 : index
    %c0_36 = arith.constant 0 : index
    %47 = vector.load %arg2[%c1_34, %c0_35, %c0_36] : memref<2x8x32xbf16, #tpu.memory_space<vmem>>, vector<1x8x32xbf16>
    %48 = vector.shape_cast %47 : vector<1x8x32xbf16> to vector<8x32xbf16>
    %49 = vector.shape_cast %48 : vector<8x32xbf16> to vector<1x8x32xbf16>
    %50 = vector.broadcast %49 : vector<1x8x32xbf16> to vector<4x8x32xbf16>
    %cst_37 = arith.constant dense<0.000000e+00> : vector<4x8x8xf32>
    %51 = tpu.matmul %46, %0, %cst_37 {dimension_numbers = #tpu.dot_dimension_numbers<[2], [2], [1], [1], [0, 0, 0, 1, 1, 1], [0], [0]>} : vector<4x8x32xbf16>, vector<4x8x32xbf16>, vector<4x8x8xf32> -> vector<4x8x8xf32>
    %52 = vector.broadcast %3 : vector<4x1x8xf32> to vector<4x8x8xf32>
    %53 = arith.addf %51, %52 : vector<4x8x8xf32>
    %cst_38 = arith.constant dense<0.000000e+00> : vector<4x8x8xf32>
    %54 = tpu.matmul %50, %1, %cst_38 {dimension_numbers = #tpu.dot_dimension_numbers<[2], [2], [1], [1], [0, 0, 0, 1, 1, 1], [0], [0]>} : vector<4x8x32xbf16>, vector<4x8x32xbf16>, vector<4x8x8xf32> -> vector<4x8x8xf32>
    %55 = vector.broadcast %4 : vector<4x1x8xf32> to vector<4x8x8xf32>
    %56 = arith.addf %54, %55 : vector<4x8x8xf32>
    %57 = arith.truncf %53 : vector<4x8x8xf32> to vector<4x8x8xbf16>
    %58 = arith.truncf %56 : vector<4x8x8xf32> to vector<4x8x8xbf16>
    %cst_39 = arith.constant dense<0.000000e+00> : vector<4x8x8xf32>
    %59 = tpu.matmul %57, %58, %cst_39 {dimension_numbers = #tpu.dot_dimension_numbers<[2], [2], [1], [1], [0, 0, 0, 1, 1, 1], [0], [0]>} : vector<4x8x8xbf16>, vector<4x8x8xbf16>, vector<4x8x8xf32> -> vector<4x8x8xf32>
    %cst_40 = arith.constant dense<0xFF800000> : vector<4x8xf32>
    %60 = vector.multi_reduction <maximumf>, %59, %cst_40 [2] : vector<4x8x8xf32> to vector<4x8xf32>
    %61 = vector.shape_cast %60 : vector<4x8xf32> to vector<4x8x1xf32>
    %62 = vector.broadcast %61 : vector<4x8x1xf32> to vector<4x8x8xf32>
    %63 = arith.subf %59, %62 : vector<4x8x8xf32>
    %64 = math.exp %63 : vector<4x8x8xf32>
    %cst_41 = arith.constant dense<0.000000e+00> : vector<4x8xf32>
    %65 = vector.multi_reduction <add>, %64, %cst_41 [2] : vector<4x8x8xf32> to vector<4x8xf32>
    %66 = vector.shape_cast %65 : vector<4x8xf32> to vector<4x8x1xf32>
    %67 = tpu.reciprocal %66 {approx = true} : vector<4x8x1xf32> -> vector<4x8x1xf32>
    %68 = vector.broadcast %67 : vector<4x8x1xf32> to vector<4x8x8xf32>
    %69 = arith.mulf %64, %68 : vector<4x8x8xf32>
    %70 = arith.truncf %69 : vector<4x8x8xf32> to vector<4x8x8xbf16>
    %cst_42 = arith.constant dense<0.000000e+00> : vector<4x8x8xf32>
    %71 = tpu.matmul %70, %58, %cst_42 {dimension_numbers = #tpu.dot_dimension_numbers<[2], [1], [1], [2], [0, 0, 0, 1, 1, 2], [0], [0]>} : vector<4x8x8xbf16>, vector<4x8x8xbf16>, vector<4x8x8xf32> -> vector<4x8x8xf32>
    %72 = arith.truncf %71 : vector<4x8x8xf32> to vector<4x8x8xbf16>
    %cst_43 = arith.constant dense<0.000000e+00> : vector<4x8x32xf32>
    %73 = tpu.matmul %72, %2, %cst_43 {dimension_numbers = #tpu.dot_dimension_numbers<[2], [2], [1], [1], [0, 0, 0, 1, 1, 1], [0], [0]>} : vector<4x8x8xbf16>, vector<4x32x8xbf16>, vector<4x8x32xf32> -> vector<4x8x32xf32>
    %cst_44 = arith.constant dense<0.000000e+00> : vector<8x32xf32>
    %74 = vector.multi_reduction <add>, %73, %cst_44 [0] : vector<4x8x32xf32> to vector<8x32xf32>
    %75 = vector.broadcast %5 : vector<1x32xf32> to vector<8x32xf32>
    %76 = arith.addf %74, %75 : vector<8x32xf32>
    %c1_45 = arith.constant 1 : index
    %c0_46 = arith.constant 0 : index
    %c0_47 = arith.constant 0 : index
    %77 = vector.load %arg9[%c1_45, %c0_46, %c0_47] : memref<2x8x32xf32, #tpu.memory_space<vmem>>, vector<1x8x32xf32>
    %78 = vector.shape_cast %77 : vector<1x8x32xf32> to vector<8x32xf32>
    %79 = vector.shape_cast %76 : vector<8x32xf32> to vector<1x8x32xf32>
    tpu.vector_store %arg9[%c1_45, %c0_46, %c0_47], %79 {strides = array<i32>} : memref<2x8x32xf32, #tpu.memory_space<vmem>>, vector<1x8x32xf32>,
    return
  }
  func.func @transform_0(%arg0: i32) -> (i32, i32, i32) {
    %c0_i32 = arith.constant 0 : i32
    %c0_i32_0 = arith.constant 0 : i32
    %c0_i32_1 = arith.constant 0 : i32
    return %arg0, %c0_i32, %c0_i32_0 : i32, i32, i32
  }
  func.func @transform_1(%arg0: i32) -> (i32, i32, i32) {
    %c0_i32 = arith.constant 0 : i32
    %c0_i32_0 = arith.constant 0 : i32
    %c0_i32_1 = arith.constant 0 : i32
    return %arg0, %c0_i32, %c0_i32_0 : i32, i32, i32
  }
  func.func @transform_2(%arg0: i32) -> (i32, i32, i32) {
    %c0_i32 = arith.constant 0 : i32
    %c0_i32_0 = arith.constant 0 : i32
    %c0_i32_1 = arith.constant 0 : i32
    %c0_i32_2 = arith.constant 0 : i32
    return %c0_i32, %c0_i32_0, %c0_i32_1 : i32, i32, i32
  }
  func.func @transform_3(%arg0: i32) -> (i32, i32, i32) {
    %c0_i32 = arith.constant 0 : i32
    %c0_i32_0 = arith.constant 0 : i32
    %c0_i32_1 = arith.constant 0 : i32
    %c0_i32_2 = arith.constant 0 : i32
    return %c0_i32, %c0_i32_0, %c0_i32_1 : i32, i32, i32
  }
  func.func @transform_4(%arg0: i32) -> (i32, i32, i32) {
    %c0_i32 = arith.constant 0 : i32
    %c0_i32_0 = arith.constant 0 : i32
    %c0_i32_1 = arith.constant 0 : i32
    %c0_i32_2 = arith.constant 0 : i32
    return %c0_i32, %c0_i32_0, %c0_i32_1 : i32, i32, i32
  }
  func.func @transform_5(%arg0: i32) -> (i32, i32, i32) {
    %c0_i32 = arith.constant 0 : i32
    %c0_i32_0 = arith.constant 0 : i32
    %c0_i32_1 = arith.constant 0 : i32
    %c0_i32_2 = arith.constant 0 : i32
    return %c0_i32, %c0_i32_0, %c0_i32_1 : i32, i32, i32
  }
  func.func @transform_6(%arg0: i32) -> (i32, i32, i32) {
    %c0_i32 = arith.constant 0 : i32
    %c0_i32_0 = arith.constant 0 : i32
    %c0_i32_1 = arith.constant 0 : i32
    %c0_i32_2 = arith.constant 0 : i32
    return %c0_i32, %c0_i32_0, %c0_i32_1 : i32, i32, i32
  }
  func.func @transform_7(%arg0: i32) -> (i32, i32) {
    %c0_i32 = arith.constant 0 : i32
    %c0_i32_0 = arith.constant 0 : i32
    %c0_i32_1 = arith.constant 0 : i32
    return %c0_i32, %c0_i32_0 : i32, i32
  }
  func.func @transform_8(%arg0: i32) -> (i32, i32, i32) {
    %c0_i32 = arith.constant 0 : i32
    %c0_i32_0 = arith.constant 0 : i32
    %c0_i32_1 = arith.constant 0 : i32
    return %arg0, %c0_i32, %c0_i32_0 : i32, i32, i32
  }
}

</mosaic_0001>

<bundles_post_ra>
// kernel: multi_headed_attention.1
= control target key start
LH: loop header
LB: loop body
LE: loop exit
PB: predicated region body
PF: predicated region fallthrough
CT: control target
= control target key end

     0   :  { %vm90_vm0 = vcmask 261120   ;;  %v2564_v2 = vmov 0.0   ;;  %vm2565_vm1 = vmmov 0   ;;  %s3046_s0 = inlined_call_operand.vmem [shape: bf16[2,8,32], index: 0, kind: input, shape index: {}]   ;;  %s3047_s1 = inlined_call_operand.vmem [shape: bf16[2,8,32], index: 1, kind: input, shape index: {}]   ;;  %s3048_s2 = inlined_call_operand.vmem [shape: bf16[4,8,32], index: 2, kind: input, shape index: {}]   ;;  %s3049_s3 = inlined_call_operand.vmem [shape: f32[4,1,8], index: 3, kind: input, shape index: {}]   ;;  %s3050_s4 = inlined_call_operand.vmem [shape: bf16[4,8,32], index: 4, kind: input, shape index: {}]   ;;  %s3051_s5 = inlined_call_operand.vmem [shape: f32[4,1,8], index: 5, kind: input, shape index: {}]   ;;  %s3052_s6 = inlined_call_operand.vmem [shape: bf16[4,32,8], index: 6, kind: input, shape index: {}]   ;;  %s3053_s7 = inlined_call_operand.vmem [shape: f32[1,32], index: 7, kind: input, shape index: {}]   ;;  %s3054_s8 = inlined_call_operand.hbm [shape: f32[2,8,32], index: 8, kind: output, shape index: {}]  }
   0x1   :  { %v31_v0 = vld [vmem:[%s3048_s2] sm:$0xf]  ;;  %v32_v1 = vld [vmem:[%s3048_s2 + $0x4] sm:$0xf]  ;;  %2241 = vmatprep.subr.bf16.mxu0 %v2564_v2  ;;  %2247 = vmatprep.subr.bf16.mxu1 %v2564_v2  ;;  %v33_v5 = vld [vmem:[%s3048_s2 + $0x8] sm:$0xf] }
   0x2   :  { %v2623_v3 = vsel %vm90_vm0, %v31_v0, 0  ;;  %v2626_v4 = vsel %vm90_vm0, %v32_v1, 0  ;;  %2243 = vmatprep.mubr.msk.bf16.mxu0 %vm2565_vm1, %v2564_v2  ;;  %2249 = vmatprep.mubr.msk.bf16.mxu1 %vm2565_vm1, %v2564_v2  ;;  %v34_v6 = vld [vmem:[%s3048_s2 + $0xc] sm:$0xf]  ;;  %v64_v7 = vld [vmem:[%s3046_s0] sm:$0xf] }
   0x3   :  { %2242 = vmatpush3.bf16.xpose.msra.mxu0 %v2623_v3  ;;  %2248 = vmatpush3.bf16.xpose.msra.mxu1 %v2626_v4  ;;  %v2646_v8 = vsel %vm90_vm0, %v33_v5, 0  ;;  %v2649_v9 = vsel %vm90_vm0, %v34_v6, 0 }
   0x4   :  { %2253 = vmatprep.subr.bf16.mxu0 %v2564_v2  ;;  %2259 = vmatprep.subr.bf16.mxu1 %v2564_v2 }
   0xa   :  { %2244 = vmatmul.mubr.msk.bf16.vlgmr.msra.gmra.mxu0 %vm90_vm0, %v64_v7  ;;  %2250 = vmatmul.mubr.msk.bf16.vlgmr.msra.gmra.mxu1 %vm90_vm0, %v64_v7 }
   0xb   :  { %2254 = vmatpush3.bf16.xpose.msra.mxu0 %v2646_v8  ;;  %2260 = vmatpush3.bf16.xpose.msra.mxu1 %v2649_v9 }
   0xc   :  { %2255 = vmatprep.mubr.msk.bf16.mxu0 %vm2565_vm1, %v2564_v2  ;;  %2261 = vmatprep.mubr.msk.bf16.mxu1 %vm2565_vm1, %v2564_v2 }
   0xd   :  { %13 = vsyncpa [#allocation3], 0  ;;  %2265 = vmatprep.subr.bf16.mxu0 %v2564_v2  ;;  %2271 = vmatprep.subr.bf16.mxu1 %v2564_v2  ;;  %v35_v10 = vld [vmem:[%s3050_s4] sm:$0xf]  ;;  %v36_v11 = vld [vmem:[%s3050_s4 + $0x4] sm:$0xf] }
   0xe   :  { %v2668_v12 = vsel %vm90_vm0, %v35_v10, 0  ;;  %v2671_v13 = vsel %vm90_vm0, %v36_v11, 0  ;;  %v37_v14 = vld [vmem:[%s3050_s4 + $0x8] sm:$0xf]  ;;  %v38_v15 = vld [vmem:[%s3050_s4 + $0xc] sm:$0xf] }
   0xf   :  { %v65_v16 = vld [vmem:[%s3047_s1] sm:$0xf]  ;;  %v2693_v17 = vsel %vm90_vm0, %v37_v14, 0  ;;  %v2696_v18 = vsel %vm90_vm0, %v38_v15, 0  ;;  %vm473_vm2 = vcmask 64512   ;;  %vm709_vm3 = vcmask 1043456  }
  0x10   :  { %v2717_v35 = vld [vmem:[%s3051_s5] ss:$0 sm:$0xff]  ;;  %v2722_v36 = vld [vmem:[%s3051_s5 + $0x1] ss:$0 sm:$0xff]  ;;  %v2741_v53 = vld [vmem:[%s3051_s5 + $0x2] ss:$0 sm:$0xff] }
  0x11   :  { %v2729_v45 = vld [vmem:[%s3049_s3] ss:$0 sm:$0xff]  ;;  %v2734_v46 = vld [vmem:[%s3049_s3 + $0x1] ss:$0 sm:$0xff]  ;;  %v2746_v54 = vld [vmem:[%s3051_s5 + $0x3] ss:$0 sm:$0xff] }
  0x12   :  { %2256 = vmatmul.mubr.msk.bf16.vlgmr.msra.gmra.mxu0 %vm90_vm0, %v64_v7  ;;  %2262 = vmatmul.mubr.msk.bf16.vlgmr.msra.gmra.mxu1 %vm90_vm0, %v64_v7  ;;  %v2761_v6 = vld [vmem:[%s3049_s3 + $0x2] ss:$0 sm:$0xff]  ;;  %v2766_v7 = vld [vmem:[%s3049_s3 + $0x3] ss:$0 sm:$0xff] }
  0x13   :  { %2266 = vmatpush3.bf16.xpose.msra.mxu0 %v2668_v12  ;;  %2272 = vmatpush3.bf16.xpose.msra.mxu1 %v2671_v13 }
  0x14   :  { %2267 = vmatprep.mubr.msk.bf16.mxu0 %vm2565_vm1, %v2564_v2  ;;  %2273 = vmatprep.mubr.msk.bf16.mxu1 %vm2565_vm1, %v2564_v2 }
  0x15   :  { %2277 = vmatprep.subr.bf16.mxu0 %v2564_v2  ;;  %2283 = vmatprep.subr.bf16.mxu1 %v2564_v2 }
  0x1a   :  { %2268 = vmatmul.mubr.msk.bf16.vlgmr.msra.gmra.mxu0 %vm90_vm0, %v65_v16  ;;  %2274 = vmatmul.mubr.msk.bf16.vlgmr.msra.gmra.mxu1 %vm90_vm0, %v65_v16 }
  0x1b   :  { %2278 = vmatpush3.bf16.xpose.msra.mxu0 %v2693_v17  ;;  %2284 = vmatpush3.bf16.xpose.msra.mxu1 %v2696_v18 }
  0x1c   :  { %2279 = vmatprep.mubr.msk.bf16.mxu0 %vm2565_vm1, %v2564_v2  ;;  %2285 = vmatprep.mubr.msk.bf16.mxu1 %vm2565_vm1, %v2564_v2 }
  0x1d   :  { %2289 = vmatprep.subr.bf16.mxu0 %v2564_v2  ;;  %2295 = vmatprep.subr.bf16.mxu1 %v2564_v2 }
  0x22   :  { %2280 = vmatmul.mubr.msk.bf16.vlgmr.msra.gmra.mxu0 %vm90_vm0, %v65_v16  ;;  %2286 = vmatmul.mubr.msk.bf16.vlgmr.msra.gmra.mxu1 %vm90_vm0, %v65_v16 }
  0x23   :  { %2291 = vmatprep.mubr.msk.bf16.mxu0 %vm2565_vm1, %v2564_v2  ;;  %2297 = vmatprep.mubr.msk.bf16.mxu1 %vm2565_vm1, %v2564_v2 }
  0xca   :  { %v131_v19 = vpop.f32.mrf.mxu0  ;;  %v174_v20 = vpop.f32.mrf.mxu1 }
  0xcb   :  { %v132_v55 = vadd.f32 %v2729_v45, %v131_v19  ;;  %v175_v56 = vadd.f32 %v2734_v46, %v174_v20 }
  0xcc   :  { %v2245_v21 = vpop.f32.mrf.mxu0  ;;  %v2251_v22 = vpop.f32.mrf.mxu1 }
  0xcd   :  { %v465_v63 = vpack.c.bf16 %v132_v55, %v132_v55  ;;  %v466_v0 = vpack.c.bf16 %v175_v56, %v175_v56 }
  0xce   :  { %v134_v23 = vpop.f32.mrf.mxu0  ;;  %v177_v24 = vpop.f32.mrf.mxu1 }
  0xd0   :  { %v2246_v25 = vpop.f32.mrf.mxu0  ;;  %v2252_v26 = vpop.f32.mrf.mxu1 }
  0xd2   :  { %v217_v27 = vpop.f32.mrf.mxu0  ;;  %v260_v28 = vpop.f32.mrf.mxu1 }
  0xd3   :  { %v218_v20 = vadd.f32 %v2761_v6, %v217_v27  ;;  %v261_v21 = vadd.f32 %v2766_v7, %v260_v28 }
  0xd4   :  { %v2257_v29 = vpop.f32.mrf.mxu0  ;;  %v2263_v30 = vpop.f32.mrf.mxu1 }
  0xd5   :  { %v467_v22 = vpack.c.bf16 %v218_v20, %v218_v20  ;;  %v468_v23 = vpack.c.bf16 %v261_v21, %v261_v21 }
  0xd6   :  { %v220_v31 = vpop.f32.mrf.mxu0  ;;  %v263_v32 = vpop.f32.mrf.mxu1 }
  0xd8   :  { %v2258_v33 = vpop.f32.mrf.mxu0  ;;  %v2264_v34 = vpop.f32.mrf.mxu1 }
  0xda   :  { %v330_v37 = vpop.f32.mrf.mxu0  ;;  %v373_v38 = vpop.f32.mrf.mxu1 }
  0xdb   :  { %v331_v39 = vadd.f32 %v2717_v35, %v330_v37  ;;  %v374_v40 = vadd.f32 %v2722_v36, %v373_v38 }
  0xdc   :  { %v2269_v41 = vpop.f32.mrf.mxu0  ;;  %v2275_v42 = vpop.f32.mrf.mxu1 }
  0xdd   :  { %v469_v43 = vpack.c.bf16 %v331_v39, %v331_v39  ;;  %v470_v44 = vpack.c.bf16 %v374_v40, %v374_v40 }
  0xde   :  { %v333_v47 = vpop.f32.mrf.mxu0  ;;  %v376_v48 = vpop.f32.mrf.mxu1 }
  0xdf   :  { %v478_v49 = vsel %vm473_vm2, %v469_v43, 0  ;;  %v524_v50 = vsel %vm473_vm2, %v470_v44, 0  ;;  %v710_v24 = vsel %vm709_vm3, %v469_v43, 0  ;;  %v755_v25 = vsel %vm709_vm3, %v470_v44, 0 }
  0xe0   :  { %v2270_v51 = vpop.f32.mrf.mxu0  ;;  %v2276_v52 = vpop.f32.mrf.mxu1  ;;  %2290 = vmatpush3.bf16.xpose.msra.mxu0 %v478_v49  ;;  %2296 = vmatpush3.bf16.xpose.msra.mxu1 %v524_v50 }
  0xe1   :  { %2301 = vmatprep.subr.bf16.mxu0 %v2564_v2  ;;  %2307 = vmatprep.subr.bf16.mxu1 %v2564_v2 }
  0xe2   :  { %v416_v57 = vpop.f32.mrf.mxu0  ;;  %v459_v58 = vpop.f32.mrf.mxu1 }
  0xe3   :  { %v417_v59 = vadd.f32 %v2741_v53, %v416_v57  ;;  %v460_v60 = vadd.f32 %v2746_v54, %v459_v58 }
  0xe4   :  { %v2281_v61 = vpop.f32.mrf.mxu0  ;;  %v2287_v62 = vpop.f32.mrf.mxu1 }
  0xe5   :  { %v2754_v1 = vpack.c.bf16 %v417_v59, %v417_v59  ;;  %v2756_v5 = vpack.c.bf16 %v460_v60, %v460_v60 }
  0xe6   :  { %v419_v10 = vpop.f32.mrf.mxu0  ;;  %v462_v11 = vpop.f32.mrf.mxu1 }
  0xe7   :  { %v570_v14 = vsel %vm473_vm2, %v2754_v1, 0  ;;  %v616_v15 = vsel %vm473_vm2, %v2756_v5, 0  ;;  %2292 = vmatmul.mubr.msk.bf16.vlgmr.msra.gmra.mxu0 %vm473_vm2, %v465_v63  ;;  %2298 = vmatmul.mubr.msk.bf16.vlgmr.msra.gmra.mxu1 %vm473_vm2, %v466_v0 }
  0xe8   :  { %2302 = vmatpush3.bf16.xpose.msra.mxu0 %v570_v14  ;;  %2308 = vmatpush3.bf16.xpose.msra.mxu1 %v616_v15  ;;  %v2282_v16 = vpop.f32.mrf.mxu0  ;;  %v2288_v19 = vpop.f32.mrf.mxu1 }
  0xe9   :  { %2303 = vmatprep.mubr.msk.bf16.mxu0 %vm2565_vm1, %v2564_v2  ;;  %2309 = vmatprep.mubr.msk.bf16.mxu1 %vm2565_vm1, %v2564_v2 }
  0xea   :  { %2313 = vmatprep.subr.bf16.mxu0 %v2564_v2  ;;  %2319 = vmatprep.subr.bf16.mxu1 %v2564_v2 }
  0xef   :  { %2304 = vmatmul.mubr.msk.bf16.vlgmr.msra.gmra.mxu0 %vm473_vm2, %v467_v22  ;;  %2310 = vmatmul.mubr.msk.bf16.vlgmr.msra.gmra.mxu1 %vm473_vm2, %v468_v23 }
  0xf0   :  { %2314 = vmatpush3.bf16.msra.mxu0 %v710_v24  ;;  %2320 = vmatpush3.bf16.msra.mxu1 %v755_v25 }
  0xf1   :  { %2315 = vmatprep.mubr.msk.bf16.mxu0 %vm2565_vm1, %v2564_v2  ;;  %2325 = vmatprep.subr.bf16.mxu0 %v2564_v2 }
  0xf2   :  { %2321 = vmatprep.mubr.msk.bf16.mxu1 %vm2565_vm1, %v2564_v2  ;;  %2331 = vmatprep.subr.bf16.mxu1 %v2564_v2 }
 0x1a7   :  { %v514_v26 = vpop.f32.mrf.mxu0  ;;  %v560_v27 = vpop.f32.mrf.mxu1 }
 0x1a8   :  { %v658_v28 = vsel %vm473_vm2, %v514_v26, -inf  ;;  %v661_v33 = vsel %vm473_vm2, %v560_v27, -inf }
 0x1a9   :  { %v2299_v29 = vpop.f32.mrf.mxu1  ;;  %659 = vmax.xlane.f32.xlu0 %v658_v28  ;;  %v2293_v30 = vpop.f32.mrf.mxu0 }
 0x1aa   :  { %v800_v29 = vsel %vm709_vm3, %v2754_v1, 0 }
 0x1ab   :  { %v517_v31 = vpop.f32.mrf.mxu0  ;;  %v563_v32 = vpop.f32.mrf.mxu1 }
 0x1ac   :  { %v2502_v32 = vld [vmem:[%s3052_s6 + $0x8] sm:$0xff]  }
 0x1ad   :  { %v2300_v34 = vpop.f32.mrf.mxu1  ;;  %662 = vmax.xlane.f32.xlu0 %v661_v33  ;;  %v2294_v37 = vpop.f32.mrf.mxu0 }
 0x1ae   :  { %v845_v34 = vsel %vm709_vm3, %v2756_v5, 0 }
 0x1af   :  { %v606_v38 = vpop.f32.mrf.mxu0  ;;  %v652_v39 = vpop.f32.mrf.mxu1 }
 0x1b0   :  { %v664_v40 = vsel %vm473_vm2, %v606_v38, -inf  ;;  %v667_v47 = vsel %vm473_vm2, %v652_v39, -inf }
 0x1b1   :  { %v2311_v41 = vpop.f32.mrf.mxu1  ;;  %665 = vmax.xlane.f32.xlu1 %v664_v40  ;;  %v2305_v42 = vpop.f32.mrf.mxu0 }
 0x1b3   :  { %v609_v43 = vpop.f32.mrf.mxu0  ;;  %v655_v44 = vpop.f32.mrf.mxu1 }
 0x1b4   :  { %v2504_v43 = vld [vmem:[%s3052_s6] sm:$0xff]  }
 0x1b5   :  { %v2312_v48 = vpop.f32.mrf.mxu1  ;;  %668 = vmax.xlane.f32.xlu1 %v667_v47  ;;  %v2306_v49 = vpop.f32.mrf.mxu0  ;;  %v2837_v44 = vsel %vm473_vm2, %v2504_v43, 0  ;;  %v2505_v47 = vld [vmem:[%s3052_s6 + $0x10] sm:$0xff]  }
 0x1b6   :  { %v2845_v48 = vsel %vm473_vm2, %v2505_v47, 0  ;;  %v2506_v49 = vld [vmem:[%s3052_s6 + $0x28] sm:$0xff]  }
 0x232   :  { %v660_v50 = vpop.xlane.xlu0 %659 }
 0x233   :  { %v670_v51 = vsub.f32 %v514_v26, %v660_v50 }
 0x235   :  { %v674_v52 = vmul.f32 1.442695, %v670_v51 }
 0x236   :  { %v663_v55 = vpop.xlane.xlu0 %662 }
 0x237   :  { %2510 = vpow2.f32 %v674_v52  ;;  %v671_v56 = vsub.f32 %v560_v27, %v663_v55  ;;  %v2854_v52 = vsel %vm473_vm2, %v2506_v49, 0  ;;  %v2507_v55 = vld [vmem:[%s3052_s6 + $0x38] sm:$0xff]  }
 0x239   :  { %v676_v57 = vmul.f32 1.442695, %v671_v56 }
 0x23a   :  { %v666_v58 = vpop.xlane.xlu1 %665 }
 0x23b   :  { %2512 = vpow2.f32 %v676_v57  ;;  %v672_v59 = vsub.f32 %v606_v38, %v666_v58  ;;  %v2815_v38 = vsel %vm473_vm2, %v2502_v32, 0 }
 0x23d   :  { %v678_v60 = vmul.f32 1.442695, %v672_v59 }
 0x23e   :  { %v669_v61 = vpop.xlane.xlu1 %668 }
 0x23f   :  { %2514 = vpow2.f32 %v678_v60  ;;  %v673_v62 = vsub.f32 %v652_v39, %v669_v61  ;;  %v2503_v39 = vld [vmem:[%s3052_s6 + $0x18] sm:$0xff]   ;;  %v2864_v60 = vsel %vm473_vm2, %v2507_v55, 0  ;;  %v2508_v61 = vld [vmem:[%s3052_s6 + $0x20] sm:$0xff]  }
 0x240   :  { %v2826_v42 = vsel %vm473_vm2, %v2503_v39, 0 }
 0x241   :  { %v680_v63 = vmul.f32 1.442695, %v673_v62 }
 0x243   :  { %2516 = vpow2.f32 %v680_v63 }
 0x244   :  { %v2511_v0 = vpop.eup %2510 }
 0x245   :  { %v682_v10 = vsel %vm473_vm2, %v2511_v0, 0.0 }
 0x246   :  { %683 = vadd.xlane.f32.xlu0 %v682_v10 }
 0x248   :  { %v2513_v11 = vpop.eup %2512 }
 0x249   :  { %v685_v14 = vsel %vm473_vm2, %v2513_v11, 0.0 }
 0x24a   :  { %686 = vadd.xlane.f32.xlu1 %v685_v14  ;;  %v2509_v14 = vld [vmem:[%s3052_s6 + $0x30] sm:$0xff]  }
 0x24c   :  { %v2515_v15 = vpop.eup %2514 }
 0x24d   :  { %v688_v16 = vsel %vm473_vm2, %v2515_v15, 0.0 }
 0x24e   :  { %689 = vadd.xlane.f32.xlu0 %v688_v16 }
 0x250   :  { %v2517_v19 = vpop.eup %2516 }
 0x251   :  { %v691_v20 = vsel %vm473_vm2, %v2517_v19, 0.0 }
 0x252   :  { %692 = vadd.xlane.f32.xlu1 %v691_v20 }
 0x2cf   :  { %v684_v21 = vpop.xlane.xlu0 %683 }
 0x2d0   :  { %2518 = vrcp.f32 %v684_v21  ;;  %v2883_v21 = vsel %vm473_vm2, %v2509_v14, 0 }
 0x2d3   :  { %v687_v22 = vpop.xlane.xlu1 %686 }
 0x2d4   :  { %2520 = vrcp.f32 %v687_v22 }
 0x2d7   :  { %v690_v23 = vpop.xlane.xlu0 %689 }
 0x2d8   :  { %2522 = vrcp.f32 %v690_v23 }
 0x2db   :  { %v693_v24 = vpop.xlane.xlu1 %692 }
 0x2dc   :  { %2524 = vrcp.f32 %v693_v24 }
 0x2dd   :  { %v2519_v25 = vpop.eup %2518 }
 0x2de   :  { %v698_v26 = vmul.f32 %v2519_v25, %v2511_v0 }
 0x2e0   :  { %v702_v27 = vpack.c.bf16 %v698_v26, %v698_v26 }
 0x2e1   :  { %v2521_v28 = vpop.eup %2520 }
 0x2e2   :  { %2316 = vmatmul.mubr.msk.bf16.vlgmr.msra.gmra.mxu0 %vm473_vm2, %v702_v27  ;;  %v699_v30 = vmul.f32 %v2521_v28, %v2513_v11  ;;  %v2875_v11 = vsel %vm473_vm2, %v2508_v61, 0  ;;  %v2131_v28 = vld [vmem:[%s3046_s0 + $0x4] sm:$0xf] }
 0x2e3   :  { %2326 = vmatpush3.bf16.msra.mxu0 %v800_v29  ;;  %2327 = vmatprep.mubr.msk.bf16.mxu0 %vm2565_vm1, %v2564_v2 }
 0x2e4   :  { %v703_v31 = vpack.c.bf16 %v699_v30, %v699_v30  ;;  %2337 = vmatprep.subr.bf16.mxu0 %v2564_v2 }
 0x2e5   :  { %v2523_v33 = vpop.eup %2522 }
 0x2e6   :  { %2322 = vmatmul.mubr.msk.bf16.vlgmr.msra.gmra.mxu1 %vm473_vm2, %v703_v31  ;;  %v700_v1 = vmul.f32 %v2523_v33, %v2515_v15 }
 0x2e7   :  { %2332 = vmatpush3.bf16.msra.mxu1 %v845_v34  ;;  %2333 = vmatprep.mubr.msk.bf16.mxu1 %vm2565_vm1, %v2564_v2 }
 0x2e8   :  { %v704_v37 = vpack.c.bf16 %v700_v1, %v700_v1  ;;  %2345 = vmatprep.subr.bf16.mxu1 %v2564_v2 }
 0x2e9   :  { %v2525_v40 = vpop.eup %2524 }
 0x2ea   :  { %2328 = vmatmul.mubr.msk.bf16.vlgmr.msra.gmra.mxu0 %vm473_vm2, %v704_v37  ;;  %v701_v5 = vmul.f32 %v2525_v40, %v2517_v19 }
 0x2eb   :  { %2338 = vmatpush3.bf16.xpose.msra.mxu0 %v2815_v38  ;;  %2341 = vmatprep.mubr.msk.bf16.mxu0 %vm2565_vm1, %v2564_v2 }
 0x2ec   :  { %v705_v41 = vpack.c.bf16 %v701_v5, %v701_v5  ;;  %2339 = vmatprep.subr.bf16.mxu0 %v2564_v2  ;;  %v2946_v5 = vld [vmem:[%s3053_s7] ss:$0 sm:$0xff]  ;;  %s2566_s7 = smov [#allocation2]  }
 0x2ed   :  { %s2083_s10 = sshll.u32 %s2566_s7, 4  ;;  %s2084_s10 = int_to_ptr.vmem [resolvable:$true] %s2083_s10 }
 0x2ee   :  { %2334 = vmatmul.mubr.msk.bf16.vlgmr.msra.gmra.mxu1 %vm473_vm2, %v705_v41  ;;  %s2542_s11 = scalar_lea.vmem %s2084_s10, 256  ;;  %p2547_p1 = scmp.lt.s32.totalorder %s2084_s10, %s2084_s10 }
 0x2ef   :  { %2346 = vmatpush3.bf16.xpose.msra.mxu1 %v2826_v42  ;;  %2349 = vmatprep.mubr.msk.bf16.mxu1 %vm2565_vm1, %v2564_v2  ;;  %p2543_p0 = scmp.ne.s32.totalorder %s2084_s10, %s2542_s11  ;;  %p2548_p2 = scmp.lt.s32.totalorder %s2542_s11, %s2542_s11 }
 0x2f0   :  { %2347 = vmatprep.subr.bf16.mxu1 %v2564_v2 }
 0x2f1   :  { %p2549_p3 = por %p2548_p2, %p2547_p1 }
 0x2f3   :  { %2340 = vmatpush3.bf16.xpose.msra.mxu0 %v2837_v44  ;;  %p2550_p4 = pnand %p2549_p3, %p2543_p0 }
 0x2f4   :  { %2353 = vmatprep.subr.bf16.mxu0 %v2564_v2 }
 0x2f7   :  { %2348 = vmatpush3.bf16.xpose.msra.mxu1 %v2845_v48 }
 0x2f8   :  { %2361 = vmatprep.subr.bf16.mxu1 %v2564_v2 }
 0x3a2   :  { %v746_v50 = vpop.f32.mrf.mxu0 }
 0x3a3   :  { %v887_v51 = vpack.c.bf16 %v746_v50, %v746_v50 }
 0x3a4   :  { %v2317_v56 = vpop.f32.mrf.mxu0 }
 0x3a5   :  { %2342 = vmatmul.mubr.msk.bf16.vlgmr.msra.gmra.mxu0 %vm473_vm2, %v887_v51 }
 0x3a6   :  { %2354 = vmatpush3.bf16.xpose.msra.mxu0 %v2854_v52  ;;  %v749_v57 = vpop.f32.mrf.mxu0  ;;  %v791_v58 = vpop.f32.mrf.mxu1  ;;  %2357 = vmatprep.mubr.msk.bf16.mxu0 %vm2565_vm1, %v2564_v2 }
 0x3a7   :  { %v888_v59 = vpack.c.bf16 %v791_v58, %v791_v58  ;;  %2355 = vmatprep.subr.bf16.mxu0 %v2564_v2 }
 0x3a8   :  { %v2318_v62 = vpop.f32.mrf.mxu0  ;;  %v2323_v63 = vpop.f32.mrf.mxu1 }
 0x3a9   :  { %2350 = vmatmul.mubr.msk.bf16.vlgmr.msra.gmra.mxu1 %vm473_vm2, %v888_v59 }
 0x3aa   :  { %2362 = vmatpush3.bf16.xpose.msra.mxu1 %v2864_v60  ;;  %v794_v0 = vpop.f32.mrf.mxu1  ;;  %v836_v10 = vpop.f32.mrf.mxu0  ;;  %2365 = vmatprep.mubr.msk.bf16.mxu1 %vm2565_vm1, %v2564_v2 }
 0x3ab   :  { %2363 = vmatprep.subr.bf16.mxu1 %v2564_v2  ;;  %v889_v25 = vpack.c.bf16 %v836_v10, %v836_v10 }
 0x3ac   :  { %v2324_v15 = vpop.f32.mrf.mxu1  ;;  %v2329_v16 = vpop.f32.mrf.mxu0 }
 0x3ae   :  { %2356 = vmatpush3.bf16.xpose.msra.mxu0 %v2875_v11  ;;  %v839_v19 = vpop.f32.mrf.mxu0  ;;  %v881_v20 = vpop.f32.mrf.mxu1 }
 0x3af   :  { %2369 = vmatprep.subr.bf16.mxu0 %v2564_v2  ;;  %v890_v27 = vpack.c.bf16 %v881_v20, %v881_v20 }
 0x3b0   :  { %v2330_v22 = vpop.f32.mrf.mxu0  ;;  %v2335_v23 = vpop.f32.mrf.mxu1 }
 0x3b2   :  { %2364 = vmatpush3.bf16.xpose.msra.mxu1 %v2883_v21  ;;  %v884_v24 = vpop.f32.mrf.mxu1 }
 0x3b3   :  { %2375 = vmatprep.subr.bf16.mxu1 %v2564_v2 }
 0x3b4   :  { %v2336_v26 = vpop.f32.mrf.mxu1 }
 0x3b5   :  { %2358 = vmatmul.mubr.msk.bf16.vlgmr.msra.gmra.mxu0 %vm473_vm2, %v889_v25 }
 0x3b6   :  { %2370 = vmatpush3.bf16.xpose.msra.mxu0 %v2623_v3  ;;  %2371 = vmatprep.mubr.msk.bf16.mxu0 %vm2565_vm1, %v2564_v2  ;;  %v2132_v3 = vld [vmem:[%s3047_s1 + $0x4] sm:$0xf] }
 0x3b7   :  { %2381 = vmatprep.subr.bf16.mxu0 %v2564_v2 }
 0x3b9   :  { %2366 = vmatmul.mubr.msk.bf16.vlgmr.msra.gmra.mxu1 %vm473_vm2, %v890_v27 }
 0x3ba   :  { %2376 = vmatpush3.bf16.xpose.msra.mxu1 %v2626_v4  ;;  %2377 = vmatprep.mubr.msk.bf16.mxu1 %vm2565_vm1, %v2564_v2 }
 0x3bb   :  { %2387 = vmatprep.subr.bf16.mxu1 %v2564_v2 }
 0x3bd   :  { %2372 = vmatmul.mubr.msk.bf16.vlgmr.msra.gmra.mxu0 %vm90_vm0, %v2131_v28 }
 0x3be   :  { %2382 = vmatpush3.bf16.xpose.msra.mxu0 %v2646_v8  ;;  %2383 = vmatprep.mubr.msk.bf16.mxu0 %vm2565_vm1, %v2564_v2 }
 0x3bf   :  { %2393 = vmatprep.subr.bf16.mxu0 %v2564_v2 }
 0x3c1   :  { %2378 = vmatmul.mubr.msk.bf16.vlgmr.msra.gmra.mxu1 %vm90_vm0, %v2131_v28 }
 0x3c2   :  { %2388 = vmatpush3.bf16.xpose.msra.mxu1 %v2649_v9  ;;  %2389 = vmatprep.mubr.msk.bf16.mxu1 %vm2565_vm1, %v2564_v2 }
 0x3c3   :  { %2399 = vmatprep.subr.bf16.mxu1 %v2564_v2 }
 0x3c5   :  { %2384 = vmatmul.mubr.msk.bf16.vlgmr.msra.gmra.mxu0 %vm90_vm0, %v2131_v28 }
 0x3c6   :  { %2394 = vmatpush3.bf16.xpose.msra.mxu0 %v2668_v12  ;;  %2395 = vmatprep.mubr.msk.bf16.mxu0 %vm2565_vm1, %v2564_v2 }
 0x3c7   :  { %2405 = vmatprep.subr.bf16.mxu0 %v2564_v2 }
 0x3c9   :  { %2390 = vmatmul.mubr.msk.bf16.vlgmr.msra.gmra.mxu1 %vm90_vm0, %v2131_v28 }
 0x3ca   :  { %2400 = vmatpush3.bf16.xpose.msra.mxu1 %v2671_v13  ;;  %2401 = vmatprep.mubr.msk.bf16.mxu1 %vm2565_vm1, %v2564_v2 }
 0x3cb   :  { %2411 = vmatprep.subr.bf16.mxu1 %v2564_v2 }
 0x3cd   :  { %2396 = vmatmul.mubr.msk.bf16.vlgmr.msra.gmra.mxu0 %vm90_vm0, %v2132_v3 }
 0x3ce   :  { %2406 = vmatpush3.bf16.xpose.msra.mxu0 %v2693_v17  ;;  %2407 = vmatprep.mubr.msk.bf16.mxu0 %vm2565_vm1, %v2564_v2 }
 0x3cf   :  { %2417 = vmatprep.subr.bf16.mxu0 %v2564_v2 }
 0x3d1   :  { %2402 = vmatmul.mubr.msk.bf16.vlgmr.msra.gmra.mxu1 %vm90_vm0, %v2132_v3 }
 0x3d2   :  { %2412 = vmatpush3.bf16.xpose.msra.mxu1 %v2696_v18  ;;  %2413 = vmatprep.mubr.msk.bf16.mxu1 %vm2565_vm1, %v2564_v2 }
 0x3d3   :  { %2423 = vmatprep.subr.bf16.mxu1 %v2564_v2 }
 0x3d5   :  { %2408 = vmatmul.mubr.msk.bf16.vlgmr.msra.gmra.mxu0 %vm90_vm0, %v2132_v3 }
 0x3d6   :  { %2419 = vmatprep.mubr.msk.bf16.mxu0 %vm2565_vm1, %v2564_v2 }
 0x3d9   :  { %2414 = vmatmul.mubr.msk.bf16.vlgmr.msra.gmra.mxu1 %vm90_vm0, %v2132_v3 }
 0x3da   :  { %2425 = vmatprep.mubr.msk.bf16.mxu1 %vm2565_vm1, %v2564_v2 }
 0x465   :  { %v944_v4 = vpop.f32.mrf.mxu0 }
 0x466   :  { %v1127_v32 = vsel %vm90_vm0, %v944_v4, 0.0 }
 0x467   :  { %v2343_v8 = vpop.f32.mrf.mxu0 }
 0x469   :  { %v947_v9 = vpop.f32.mrf.mxu0  ;;  %v1003_v12 = vpop.f32.mrf.mxu1 }
 0x46a   :  { %v1128_v30 = vsel %vm90_vm0, %v1003_v12, 0.0 }
 0x46b   :  { %v2344_v13 = vpop.f32.mrf.mxu0  ;;  %v2351_v17 = vpop.f32.mrf.mxu1  ;;  %v1129_v34 = vadd.f32 %v1128_v30, %v1127_v32 }
 0x46d   :  { %v1006_v18 = vpop.f32.mrf.mxu1 }
 0x46f   :  { %v2352_v29 = vpop.f32.mrf.mxu1 }
 0x475   :  { %v1062_v31 = vpop.f32.mrf.mxu0 }
 0x476   :  { %v1130_v33 = vsel %vm90_vm0, %v1062_v31, 0.0 }
 0x477   :  { %v2359_v1 = vpop.f32.mrf.mxu0  ;;  %v1131_v37 = vadd.f32 %v1130_v33, %v1129_v34 }
 0x479   :  { %v1065_v39 = vpop.f32.mrf.mxu0  ;;  %v1121_v40 = vpop.f32.mrf.mxu1 }
 0x47a   :  { %v1132_v41 = vsel %vm90_vm0, %v1121_v40, 0.0 }
 0x47b   :  { %v1133_v43 = vadd.f32 %v1132_v41, %v1131_v37  ;;  %v2360_v47 = vpop.f32.mrf.mxu0  ;;  %v2367_v49 = vpop.f32.mrf.mxu1 }
 0x47d   :  { %v1140_v50 = vadd.f32 %v2946_v5, %v1133_v43  ;;  %v1124_v51 = vpop.f32.mrf.mxu1  ;;  %v1183_v55 = vpop.f32.mrf.mxu0 }
 0x47e   :  { %v1184_v13 = vadd.f32 %v2729_v45, %v1183_v55 }
 0x47f   :  { %1141 = vst.msk [vmem:[#allocation2] sm:$0xff] %vm90_vm0, %v1140_v50  ;;  %v2368_v56 = vpop.f32.mrf.mxu1  ;;  %v2373_v57 = vpop.f32.mrf.mxu0 }
 0x480   :  { %v1472_v33 = vpack.c.bf16 %v1184_v13, %v1184_v13 }
 0x481   :  { %v1186_v58 = vpop.f32.mrf.mxu0  ;;  %v1223_v59 = vpop.f32.mrf.mxu1 }
 0x483   :  { %v2374_v61 = vpop.f32.mrf.mxu0  ;;  %v2379_v62 = vpop.f32.mrf.mxu1 }
 0x485   :  { %v1226_v63 = vpop.f32.mrf.mxu1  ;;  %v1263_v0 = vpop.f32.mrf.mxu0 }
 0x486   :  { %v1264_v41 = vadd.f32 %v2761_v6, %v1263_v0 }
 0x487   :  { %v2380_v10 = vpop.f32.mrf.mxu1  ;;  %v2385_v14 = vpop.f32.mrf.mxu0 }
 0x488   :  { %v1474_v50 = vpack.c.bf16 %v1264_v41, %v1264_v41 }
 0x489   :  { %v1266_v15 = vpop.f32.mrf.mxu0  ;;  %v1303_v16 = vpop.f32.mrf.mxu1 }
 0x48a   :  { %v1304_v51 = vadd.f32 %v2766_v7, %v1303_v16 }
 0x48b   :  { %v2386_v19 = vpop.f32.mrf.mxu0  ;;  %v2391_v20 = vpop.f32.mrf.mxu1 }
 0x48c   :  { %v1475_v55 = vpack.c.bf16 %v1304_v51, %v1304_v51 }
 0x48d   :  { %v1306_v22 = vpop.f32.mrf.mxu1  ;;  %v1346_v23 = vpop.f32.mrf.mxu0 }
 0x48e   :  { %v1347_v24 = vadd.f32 %v2717_v35, %v1346_v23 }
 0x48f   :  { %v2392_v25 = vpop.f32.mrf.mxu1  ;;  %v2397_v26 = vpop.f32.mrf.mxu0 }
 0x490   :  { %v1476_v27 = vpack.c.bf16 %v1347_v24, %v1347_v24 }
 0x491   :  { %v1349_v28 = vpop.f32.mrf.mxu0  ;;  %v1386_v3 = vpop.f32.mrf.mxu1 }
 0x492   :  { %v1484_v4 = vsel %vm473_vm2, %v1476_v27, 0  ;;  %v1387_v8 = vadd.f32 %v2722_v36, %v1386_v3  ;;  %v1224_v36 = vadd.f32 %v2734_v46, %v1223_v59  ;;  %v1715_v6 = vsel %vm709_vm3, %v1476_v27, 0 }
 0x493   :  { %v2398_v9 = vpop.f32.mrf.mxu0  ;;  %v2403_v12 = vpop.f32.mrf.mxu1  ;;  %2418 = vmatpush3.bf16.xpose.msra.mxu0 %v1484_v4 }
 0x494   :  { %v1477_v17 = vpack.c.bf16 %v1387_v8, %v1387_v8  ;;  %2429 = vmatprep.subr.bf16.mxu0 %v2564_v2  ;;  %v1473_v46 = vpack.c.bf16 %v1224_v36, %v1224_v36 }
 0x495   :  { %v1389_v18 = vpop.f32.mrf.mxu1  ;;  %v1426_v29 = vpop.f32.mrf.mxu0 }
 0x496   :  { %v1530_v35 = vsel %vm473_vm2, %v1477_v17, 0  ;;  %v1427_v30 = vadd.f32 %v2741_v53, %v1426_v29  ;;  %v1760_v56 = vsel %vm709_vm3, %v1477_v17, 0 }
 0x497   :  { %v2404_v31 = vpop.f32.mrf.mxu1  ;;  %2424 = vmatpush3.bf16.xpose.msra.mxu1 %v1530_v35  ;;  %v2409_v32 = vpop.f32.mrf.mxu0 }
 0x498   :  { %v2959_v34 = vpack.c.bf16 %v1427_v30, %v1427_v30  ;;  %2435 = vmatprep.subr.bf16.mxu1 %v2564_v2 }
 0x499   :  { %v1466_v45 = vpop.f32.mrf.mxu1  ;;  %v1429_v1 = vpop.f32.mrf.mxu0 }
 0x49a   :  { %v1576_v37 = vsel %vm473_vm2, %v2959_v34, 0  ;;  %v1467_v39 = vadd.f32 %v2746_v54, %v1466_v45  ;;  %2420 = vmatmul.mubr.msk.bf16.vlgmr.msra.gmra.mxu0 %vm473_vm2, %v1472_v33  ;;  %v1805_v51 = vsel %vm709_vm3, %v2959_v34, 0 }
 0x49b   :  { %2430 = vmatpush3.bf16.xpose.msra.mxu0 %v1576_v37  ;;  %v2415_v53 = vpop.f32.mrf.mxu1  ;;  %v2410_v40 = vpop.f32.mrf.mxu0  ;;  %2431 = vmatprep.mubr.msk.bf16.mxu0 %vm2565_vm1, %v2564_v2 }
 0x49c   :  { %v2969_v43 = vpack.c.bf16 %v1467_v39, %v1467_v39  ;;  %2441 = vmatprep.subr.bf16.mxu0 %v2564_v2 }
 0x49d   :  { %v1469_v47 = vpop.f32.mrf.mxu1 }
 0x49e   :  { %v1622_v49 = vsel %vm473_vm2, %v2969_v43, 0  ;;  %2426 = vmatmul.mubr.msk.bf16.vlgmr.msra.gmra.mxu1 %vm473_vm2, %v1473_v46 }
 0x49f   :  { %2436 = vmatpush3.bf16.xpose.msra.mxu1 %v1622_v49  ;;  %v2416_v54 = vpop.f32.mrf.mxu1  ;;  %2437 = vmatprep.mubr.msk.bf16.mxu1 %vm2565_vm1, %v2564_v2 }
 0x4a0   :  { %2447 = vmatprep.subr.bf16.mxu1 %v2564_v2 }
 0x4a2   :  { %2432 = vmatmul.mubr.msk.bf16.vlgmr.msra.gmra.mxu0 %vm473_vm2, %v1474_v50 }
 0x4a3   :  { %2442 = vmatpush3.bf16.msra.mxu0 %v1715_v6  ;;  %2443 = vmatprep.mubr.msk.bf16.mxu0 %vm2565_vm1, %v2564_v2 }
 0x4a4   :  { %2453 = vmatprep.subr.bf16.mxu0 %v2564_v2 }
 0x4a6   :  { %2438 = vmatmul.mubr.msk.bf16.vlgmr.msra.gmra.mxu1 %vm473_vm2, %v1475_v55 }
 0x4a7   :  { %2448 = vmatpush3.bf16.msra.mxu1 %v1760_v56  ;;  %2449 = vmatprep.mubr.msk.bf16.mxu1 %vm2565_vm1, %v2564_v2 }
 0x4a8   :  { %2459 = vmatprep.subr.bf16.mxu1 %v2564_v2 }
 0x55a   :  { %v1520_v7 = vpop.f32.mrf.mxu0 }
 0x55b   :  { %v1664_v57 = vsel %vm473_vm2, %v1520_v7, -inf }
 0x55c   :  { %1665 = vmax.xlane.f32.xlu0 %v1664_v57  ;;  %v2421_v58 = vpop.f32.mrf.mxu0 }
 0x55e   :  { %v1523_v59 = vpop.f32.mrf.mxu0  ;;  %v1566_v61 = vpop.f32.mrf.mxu1 }
 0x55f   :  { %v1667_v62 = vsel %vm473_vm2, %v1566_v61, -inf }
 0x560   :  { %1668 = vmax.xlane.f32.xlu1 %v1667_v62  ;;  %v2422_v63 = vpop.f32.mrf.mxu0  ;;  %v2427_v0 = vpop.f32.mrf.mxu1 }
 0x562   :  { %v1569_v10 = vpop.f32.mrf.mxu1  ;;  %v1612_v14 = vpop.f32.mrf.mxu0 }
 0x563   :  { %v1670_v15 = vsel %vm473_vm2, %v1612_v14, -inf }
 0x564   :  { %v2428_v16 = vpop.f32.mrf.mxu1  ;;  %1671 = vmax.xlane.f32.xlu0 %v1670_v15  ;;  %v2433_v19 = vpop.f32.mrf.mxu0 }
 0x566   :  { %v1615_v20 = vpop.f32.mrf.mxu0  ;;  %v1658_v22 = vpop.f32.mrf.mxu1 }
 0x567   :  { %v1673_v23 = vsel %vm473_vm2, %v1658_v22, -inf }
 0x568   :  { %1674 = vmax.xlane.f32.xlu1 %v1673_v23  ;;  %v2434_v24 = vpop.f32.mrf.mxu0  ;;  %v2439_v25 = vpop.f32.mrf.mxu1 }
 0x56a   :  { %v1661_v26 = vpop.f32.mrf.mxu1 }
 0x56c   :  { %v2440_v27 = vpop.f32.mrf.mxu1 }
 0x5e5   :  { %v1666_v28 = vpop.xlane.xlu0 %1665 }
 0x5e6   :  { %v1676_v3 = vsub.f32 %v1520_v7, %v1666_v28  ;;  %v1850_v7 = vsel %vm709_vm3, %v2969_v43, 0 }
 0x5e8   :  { %v1680_v4 = vmul.f32 1.442695, %v1676_v3 }
 0x5e9   :  { %v1669_v8 = vpop.xlane.xlu1 %1668 }
 0x5ea   :  { %2526 = vpow2.f32 %v1680_v4  ;;  %v1677_v9 = vsub.f32 %v1566_v61, %v1669_v8 }
 0x5ec   :  { %v1682_v12 = vmul.f32 1.442695, %v1677_v9 }
 0x5ed   :  { %v1672_v13 = vpop.xlane.xlu0 %1671 }
 0x5ee   :  { %2528 = vpow2.f32 %v1682_v12  ;;  %v1678_v17 = vsub.f32 %v1612_v14, %v1672_v13 }
 0x5f0   :  { %v1684_v18 = vmul.f32 1.442695, %v1678_v17 }
 0x5f1   :  { %v1675_v29 = vpop.xlane.xlu1 %1674 }
 0x5f2   :  { %2530 = vpow2.f32 %v1684_v18  ;;  %v1679_v35 = vsub.f32 %v1658_v22, %v1675_v29 }
 0x5f4   :  { %v1686_v30 = vmul.f32 1.442695, %v1679_v35 }
 0x5f6   :  { %2532 = vpow2.f32 %v1686_v30 }
 0x5f7   :  { %v2527_v31 = vpop.eup %2526 }
 0x5f8   :  { %v1688_v32 = vsel %vm473_vm2, %v2527_v31, 0.0 }
 0x5f9   :  { %1689 = vadd.xlane.f32.xlu0 %v1688_v32 }
 0x5fb   :  { %v2529_v33 = vpop.eup %2528 }
 0x5fc   :  { %v1691_v36 = vsel %vm473_vm2, %v2529_v33, 0.0 }
 0x5fd   :  { %1692 = vadd.xlane.f32.xlu1 %v1691_v36 }
 0x5ff   :  { %v2531_v45 = vpop.eup %2530 }
 0x600   :  { %v1694_v1 = vsel %vm473_vm2, %v2531_v45, 0.0 }
 0x601   :  { %1695 = vadd.xlane.f32.xlu0 %v1694_v1 }
 0x603   :  { %v2533_v37 = vpop.eup %2532 }
 0x604   :  { %v1697_v39 = vsel %vm473_vm2, %v2533_v37, 0.0 }
 0x605   :  { %1698 = vadd.xlane.f32.xlu1 %v1697_v39 }
 0x682   :  { %v1690_v53 = vpop.xlane.xlu0 %1689 }
 0x683   :  { %2534 = vrcp.f32 %v1690_v53 }
 0x686   :  { %v1693_v40 = vpop.xlane.xlu1 %1692 }
 0x687   :  { %2536 = vrcp.f32 %v1693_v40 }
 0x68a   :  { %v1696_v46 = vpop.xlane.xlu0 %1695 }
 0x68b   :  { %2538 = vrcp.f32 %v1696_v46 }
 0x68e   :  { %v1699_v41 = vpop.xlane.xlu1 %1698 }
 0x68f   :  { %2540 = vrcp.f32 %v1699_v41 }
 0x690   :  { %v2535_v47 = vpop.eup %2534 }
 0x691   :  { %v1704_v49 = vmul.f32 %v2535_v47, %v2527_v31 }
 0x693   :  { %v1708_v54 = vpack.c.bf16 %v1704_v49, %v1704_v49 }
 0x694   :  { %v2537_v50 = vpop.eup %2536 }
 0x695   :  { %2444 = vmatmul.mubr.msk.bf16.vlgmr.msra.gmra.mxu0 %vm473_vm2, %v1708_v54  ;;  %v1705_v6 = vmul.f32 %v2537_v50, %v2529_v33 }
 0x696   :  { %2454 = vmatpush3.bf16.msra.mxu0 %v1805_v51  ;;  %2455 = vmatprep.mubr.msk.bf16.mxu0 %vm2565_vm1, %v2564_v2 }
 0x697   :  { %v1709_v55 = vpack.c.bf16 %v1705_v6, %v1705_v6  ;;  %2465 = vmatprep.subr.bf16.mxu0 %v2564_v2 }
 0x698   :  { %v2539_v56 = vpop.eup %2538 }
 0x699   :  { %2450 = vmatmul.mubr.msk.bf16.vlgmr.msra.gmra.mxu1 %vm473_vm2, %v1709_v55  ;;  %v1706_v57 = vmul.f32 %v2539_v56, %v2531_v45 }
 0x69a   :  { %2460 = vmatpush3.bf16.msra.mxu1 %v1850_v7  ;;  %2461 = vmatprep.mubr.msk.bf16.mxu1 %vm2565_vm1, %v2564_v2 }
 0x69b   :  { %v1710_v34 = vpack.c.bf16 %v1706_v57, %v1706_v57  ;;  %2473 = vmatprep.subr.bf16.mxu1 %v2564_v2 }
 0x69c   :  { %v2541_v58 = vpop.eup %2540 }
 0x69d   :  { %2456 = vmatmul.mubr.msk.bf16.vlgmr.msra.gmra.mxu0 %vm473_vm2, %v1710_v34  ;;  %v1707_v59 = vmul.f32 %v2541_v58, %v2533_v37 }
 0x69e   :  { %2466 = vmatpush3.bf16.xpose.msra.mxu0 %v2815_v38  ;;  %2469 = vmatprep.mubr.msk.bf16.mxu0 %vm2565_vm1, %v2564_v2 }
 0x69f   :  { %v1711_v43 = vpack.c.bf16 %v1707_v59, %v1707_v59  ;;  %2467 = vmatprep.subr.bf16.mxu0 %v2564_v2 }
 0x6a1   :  { %2462 = vmatmul.mubr.msk.bf16.vlgmr.msra.gmra.mxu1 %vm473_vm2, %v1711_v43 }
 0x6a2   :  { %2474 = vmatpush3.bf16.xpose.msra.mxu1 %v2826_v42  ;;  %2477 = vmatprep.mubr.msk.bf16.mxu1 %vm2565_vm1, %v2564_v2 }
 0x6a3   :  { %2475 = vmatprep.subr.bf16.mxu1 %v2564_v2 }
 0x6a6   :  { %2468 = vmatpush3.bf16.xpose.msra.mxu0 %v2837_v44 }
 0x6a7   :  { %2481 = vmatprep.subr.bf16.mxu0 %v2564_v2 }
 0x6aa   :  { %2476 = vmatpush3.bf16.xpose.msra.mxu1 %v2845_v48 }
 0x6ab   :  { %2489 = vmatprep.subr.bf16.mxu1 %v2564_v2 }
 0x755   :  { %v1751_v38 = vpop.f32.mrf.mxu0 }
 0x756   :  { %v1892_v61 = vpack.c.bf16 %v1751_v38, %v1751_v38 }
 0x757   :  { %v2445_v62 = vpop.f32.mrf.mxu0 }
 0x758   :  { %2470 = vmatmul.mubr.msk.bf16.vlgmr.msra.gmra.mxu0 %vm473_vm2, %v1892_v61 }
 0x759   :  { %2482 = vmatpush3.bf16.xpose.msra.mxu0 %v2854_v52  ;;  %v1754_v42 = vpop.f32.mrf.mxu0  ;;  %v1796_v63 = vpop.f32.mrf.mxu1  ;;  %2485 = vmatprep.mubr.msk.bf16.mxu0 %vm2565_vm1, %v2564_v2 }
 0x75a   :  { %v1893_v0 = vpack.c.bf16 %v1796_v63, %v1796_v63  ;;  %2483 = vmatprep.subr.bf16.mxu0 %v2564_v2 }
 0x75b   :  { %v2446_v44 = vpop.f32.mrf.mxu0  ;;  %v2451_v10 = vpop.f32.mrf.mxu1 }
 0x75c   :  { %2478 = vmatmul.mubr.msk.bf16.vlgmr.msra.gmra.mxu1 %vm473_vm2, %v1893_v0 }
 0x75d   :  { %2490 = vmatpush3.bf16.xpose.msra.mxu1 %v2864_v60  ;;  %v1799_v48 = vpop.f32.mrf.mxu1  ;;  %v1841_v14 = vpop.f32.mrf.mxu0  ;;  %2493 = vmatprep.mubr.msk.bf16.mxu1 %vm2565_vm1, %v2564_v2 }
 0x75e   :  { %2491 = vmatprep.subr.bf16.mxu1 %v2564_v2  ;;  %v1894_v24 = vpack.c.bf16 %v1841_v14, %v1841_v14 }
 0x75f   :  { %v2452_v52 = vpop.f32.mrf.mxu1  ;;  %v2457_v15 = vpop.f32.mrf.mxu0 }
 0x761   :  { %2484 = vmatpush3.bf16.xpose.msra.mxu0 %v2875_v11  ;;  %v1844_v16 = vpop.f32.mrf.mxu0  ;;  %v1886_v19 = vpop.f32.mrf.mxu1 }
 0x762   :  { %v1895_v25 = vpack.c.bf16 %v1886_v19, %v1886_v19 }
 0x763   :  { %v2458_v20 = vpop.f32.mrf.mxu0  ;;  %v2463_v22 = vpop.f32.mrf.mxu1 }
 0x765   :  { %2492 = vmatpush3.bf16.xpose.msra.mxu1 %v2883_v21  ;;  %v1889_v23 = vpop.f32.mrf.mxu1 }
 0x767   :  { %v2464_v60 = vpop.f32.mrf.mxu1 }
 0x768   :  { %2486 = vmatmul.mubr.msk.bf16.vlgmr.msra.gmra.mxu0 %vm473_vm2, %v1894_v24 }
 0x76c   :  { %2494 = vmatmul.mubr.msk.bf16.vlgmr.msra.gmra.mxu1 %vm473_vm2, %v1895_v25 }
 0x818   :  { %v1933_v26 = vpop.f32.mrf.mxu0 }
 0x819   :  { %v2068_v21 = vsel %vm90_vm0, %v1933_v26, 0.0 }
 0x81a   :  { %v2471_v2 = vpop.f32.mrf.mxu0 }
 0x81c   :  { %v1936_v27 = vpop.f32.mrf.mxu0  ;;  %v1976_v28 = vpop.f32.mrf.mxu1 }
 0x81d   :  { %v2069_v9 = vsel %vm90_vm0, %v1976_v28, 0.0 }
 0x81e   :  { %v2472_v3 = vpop.f32.mrf.mxu0  ;;  %v2479_v11 = vpop.f32.mrf.mxu1  ;;  %v2070_v17 = vadd.f32 %v2069_v9, %v2068_v21 }
 0x820   :  { %v1979_v4 = vpop.f32.mrf.mxu1 }
 0x822   :  { %v2480_v8 = vpop.f32.mrf.mxu1 }
 0x828   :  { %v2019_v12 = vpop.f32.mrf.mxu0 }
 0x829   :  { %v2071_v13 = vsel %vm90_vm0, %v2019_v12, 0.0 }
 0x82a   :  { %v2487_v18 = vpop.f32.mrf.mxu0  ;;  %v2072_v29 = vadd.f32 %v2071_v13, %v2070_v17 }
 0x82c   :  { %v2022_v35 = vpop.f32.mrf.mxu0  ;;  %v2062_v30 = vpop.f32.mrf.mxu1 }
 0x82d   :  { %v2073_v31 = vsel %vm90_vm0, %v2062_v30, 0.0 }
 0x82e   :  { %v2074_v32 = vadd.f32 %v2073_v31, %v2072_v29  ;;  %v2488_v33 = vpop.f32.mrf.mxu0  ;;  %v2495_v36 = vpop.f32.mrf.mxu1 }
 0x830   :  { %v2075_v45 = vadd.f32 %v2946_v5, %v2074_v32  ;;  %v2065_v1 = vpop.f32.mrf.mxu1 }
 0x832   :  { %2077 = vst.msk [vmem:[#allocation2 + $0x8] sm:$0xff] %vm90_vm0, %v2075_v45  ;;  %v2496_v37 = vpop.f32.mrf.mxu1 }
 0x833   :  { %2553 = shalt.err (!%p2550_p4)
}
 0x834   :  { %s2567_s12 = smov 128   ;;  %s2568_s5 = smov 8  }
 0x835   :  { %2089 = dma.vmem_to_hbm [thread:$0]  %s2084_s10, 256, %s3054_s8, [#allocation3], %s2567_s12, %s2567_s12, %s2568_s5  }
 0x836   :  { %2562 = dma.done.wait [#allocation3], 256  }
 0x837   :  { %2563 = vsyncadd [#allocation3], 4294967040 }
 0x838   :  { %2093 = vsyncpa [#allocation3], 1 }

</bundles_post_ra>
